<compile_context>
chip_gen: v7x
topology: tpu7x:2x2x1
jax: 0.10.0
libtpu: 0.0.40
codegen_flags: <defaults>
</compile_context>

<pallas_src>
import jax
import jax.numpy as jnp
from jax.experimental import pallas as pl
from jax.experimental.pallas import tpu as pltpu

LANE_PAD = 128   # pad all channel dims to a full lane width
ROW_PAD = 8      # pad the per-graph output block to a full f32 sublane tile

_PARAM_ORDER = ("w1r", "w1o", "b1",
                "w2r", "w2o", "b2",
                "w3r", "w3o", "b3",
                "wlin", "blin")


# ----------------------------------------------------------------------------
# Fused kernel (one grid step == one graph):
#   conv1 -> relu -> conv2 -> relu -> conv3 -> mean_pool -> linear
# ----------------------------------------------------------------------------
def _tgcn_fused_kernel(a_ref, x_ref,
                       w1r_ref, w1o_ref, b1_ref,
                       w2r_ref, w2o_ref, b2_ref,
                       w3r_ref, w3o_ref, b3_ref,
                       wlin_ref, blin_ref, o_ref):
    a = a_ref[...]        # (n, n)        bf16, this graph's adjacency block
    h = x_ref[...]        # (n, LANE_PAD) bf16, zero-padded channels

    def gconv(h_bf, wr_ref, wo_ref, b_ref, relu):
        # Weighted neighbor aggregation restricted to this graph's block.
        agg = jnp.dot(a, h_bf, preferred_element_type=jnp.float32)
        # Two accumulating dots (no concat([agg, h]) temporary).
        out = (jnp.dot(agg.astype(jnp.bfloat16), wr_ref[...],
                       preferred_element_type=jnp.float32)
               + jnp.dot(h_bf, wo_ref[...],
                         preferred_element_type=jnp.float32)
               + b_ref[...])                      # bias add in f32
        if relu:
            out = jnp.maximum(out, 0.0)           # ReLU in f32
        return out

    h1 = gconv(h, w1r_ref, w1o_ref, b1_ref, True).astype(jnp.bfloat16)
    h2 = gconv(h1, w2r_ref, w2o_ref, b2_ref, True).astype(jnp.bfloat16)
    h3 = gconv(h2, w3r_ref, w3o_ref, b3_ref, False)       # stays f32

    # global_mean_pool over this graph's nodes: in-tile reduce (P dropped).
    pooled = jnp.mean(h3, axis=0, keepdims=True)          # (1, LANE_PAD) f32
    res = (jnp.dot(pooled.astype(jnp.bfloat16), wlin_ref[...],
                   preferred_element_type=jnp.float32)
           + blin_ref[...])                               # (1, LANE_PAD) f32

    # Unmasked (8, 128) store; row 0 carries the result, sliced outside.
    o_ref[...] = jnp.broadcast_to(res, o_ref.shape).astype(o_ref.dtype)


# ----------------------------------------------------------------------------
# Wrapper
# ----------------------------------------------------------------------------
def tgcn_forward(packed, x_blocks, a_blocks, c_out):
    """Single fused pallas_call, grid over graphs. Returns (num_graphs, c_out)."""
    num_graphs, n, _ = a_blocks.shape

    def const_spec(shape):
        return pl.BlockSpec(shape, lambda g: (0,) * len(shape))

    in_specs = [
        pl.BlockSpec((None, n, n), lambda g: (g, 0, 0)),          # A_g
        pl.BlockSpec((None, n, LANE_PAD), lambda g: (g, 0, 0)),   # X_g
    ] + [const_spec(packed[k].shape) for k in _PARAM_ORDER]       # weights

    out_pad = pl.pallas_call(
        _tgcn_fused_kernel,
        out_shape=jax.ShapeDtypeStruct((num_graphs, ROW_PAD, LANE_PAD),
                                       jnp.float32),
        grid=(num_graphs,),
        in_specs=in_specs,
        out_specs=pl.BlockSpec((None, ROW_PAD, LANE_PAD),
                               lambda g: (g, 0, 0)),
        compiler_params=pltpu.CompilerParams(
            dimension_semantics=("parallel",)),   # v7x: split graphs over 2 TCs
    )(a_blocks, x_blocks, *[packed[k] for k in _PARAM_ORDER])

    return out_pad[:, 0, :c_out]


# ----------------------------------------------------------------------------
# Parameter construction / packing
# ----------------------------------------------------------------------------
def init_params(key, c_in, hidden, c_out):
    ks = jax.random.split(key, 8)

    def lin_w(k, fan_in, fan_out):
        bound = 1.0 / jnp.sqrt(fan_in)
        return jax.random.uniform(k, (fan_in, fan_out), jnp.float32,
                                  -bound, bound)

    return {
        "w_rel1": lin_w(ks[0], c_in, hidden),
        "w_root1": lin_w(ks[1], c_in, hidden),
        "b_rel1": jnp.zeros((1, hidden), jnp.float32),
        "w_rel2": lin_w(ks[2], hidden, hidden),
        "w_root2": lin_w(ks[3], hidden, hidden),
        "b_rel2": jnp.zeros((1, hidden), jnp.float32),
        "w_rel3": lin_w(ks[4], hidden, hidden),
        "w_root3": lin_w(ks[5], hidden, hidden),
        "b_rel3": jnp.zeros((1, hidden), jnp.float32),
        "w_lin": lin_w(ks[6], hidden, c_out),
        "b_lin": jax.random.uniform(ks[7], (1, c_out), jnp.float32,
                                    -1.0 / jnp.sqrt(hidden),
                                    1.0 / jnp.sqrt(hidden)),
    }


def pack_params(params, pad=LANE_PAD):
    """Zero-pad channels to `pad` lanes; weights in bf16 (MXU), biases in f32."""
    def pad_w(w):
        out = jnp.zeros((pad, pad), jnp.float32)
        out = out.at[:w.shape[0], :w.shape[1]].set(w)
        return out.astype(jnp.bfloat16)

    def pad_b(b):
        return jnp.zeros((1, pad), jnp.float32).at[:, :b.shape[1]].set(b)

    return {
        "w1r": pad_w(params["w_rel1"]), "w1o": pad_w(params["w_root1"]),
        "b1": pad_b(params["b_rel1"]),
        "w2r": pad_w(params["w_rel2"]), "w2o": pad_w(params["w_root2"]),
        "b2": pad_b(params["b_rel2"]),
        "w3r": pad_w(params["w_rel3"]), "w3o": pad_w(params["w_root3"]),
        "b3": pad_b(params["b_rel3"]),
        "wlin": pad_w(params["w_lin"]), "blin": pad_b(params["b_lin"]),
    }


def build_graph(key, num_graphs, nodes_per_graph):
    """Ring graph per sample; dense weighted adjacency A[target, src] and the
    mean-pool matrix P[graph, node] (P only used by the reference)."""
    N = num_graphs * nodes_per_graph
    srcs, dsts = [], []
    for g in range(num_graphs):
        base = g * nodes_per_graph
        for i in range(nodes_per_graph):
            srcs += [base + i, base + (i + 1) % nodes_per_graph]
            dsts += [base + (i + 1) % nodes_per_graph, base + i]
    src = jnp.array(srcs, jnp.int32)
    dst = jnp.array(dsts, jnp.int32)
    edge_weight = jax.random.uniform(key, (src.shape[0],), jnp.float32,
                                     0.5, 1.5)
    A = jnp.zeros((N, N), jnp.float32).at[dst, src].add(edge_weight)

    batch = jnp.repeat(jnp.arange(num_graphs, dtype=jnp.int32),
                       nodes_per_graph)
    P = (jnp.arange(num_graphs)[:, None] == batch[None, :]).astype(jnp.float32)
    P = P / jnp.float32(nodes_per_graph)   # mean pool
    return A, P


# ----------------------------------------------------------------------------
# References
# ----------------------------------------------------------------------------
def tgcn_reference_f32(params, x, A, P):
    """Pure-f32 unfused reference (PyTorch-style numerics)."""
    def gconv(h, w_rel, w_root, b, relu):
        out = (A @ h) @ w_rel + h @ w_root + b
        return jnp.maximum(out, 0.0) if relu else out

    h = gconv(x, params["w_rel1"], params["w_root1"], params["b_rel1"], True)
    h = gconv(h, params["w_rel2"], params["w_root2"], params["b_rel2"], True)
    h = gconv(h, params["w_rel3"], params["w_root3"], params["b_rel3"], False)
    return (P @ h) @ params["w_lin"] + params["b_lin"]


def tgcn_reference_bf16(params, x, A, P):
    """Mirror of the kernel's numerics: bf16 matmul inputs, f32 accumulation,
    f32 bias/ReLU.  Used for the tight correctness check."""
    bf = jnp.bfloat16

    def mm(a, b):
        return jnp.dot(a.astype(bf), b.astype(bf),
                       preferred_element_type=jnp.float32)

    def gconv(h, w_rel, w_root, b, relu):
        agg = mm(A, h)
        out = mm(agg, w_rel) + mm(h, w_root) + b
        return jnp.maximum(out, 0.0) if relu else out

    h = gconv(x, params["w_rel1"], params["w_root1"], params["b_rel1"], True)
    h = gconv(h, params["w_rel2"], params["w_root2"], params["b_rel2"], True)
    h = gconv(h, params["w_rel3"], params["w_root3"], params["b_rel3"], False)
    pooled = P @ h
    return mm(pooled, params["w_lin"]) + params["b_lin"]


# ----------------------------------------------------------------------------
if __name__ == "__main__":
    INPUT_CHANNELS = 8
    HIDDEN_CHANNELS = 32
    OUTPUT_CHANNELS = 4
    NUM_GRAPHS = 2
    NODES_PER_GRAPH = 16
    N = NUM_GRAPHS * NODES_PER_GRAPH

    root = jax.random.PRNGKey(0)
    k_x, k_p, k_e = jax.random.split(root, 3)

    x = jax.random.normal(k_x, (N, INPUT_CHANNELS), jnp.float32)
    params = init_params(k_p, INPUT_CHANNELS, HIDDEN_CHANNELS, OUTPUT_CHANNELS)
    A, P = build_graph(k_e, NUM_GRAPHS, NODES_PER_GRAPH)

    # Host-side packing: per-graph adjacency blocks (A is block-diagonal since
    # graphs are disjoint), lane-padded per-graph feature blocks, bf16 inputs.
    n = NODES_PER_GRAPH
    a_blocks = jnp.stack(
        [A[g * n:(g + 1) * n, g * n:(g + 1) * n] for g in range(NUM_GRAPHS)]
    ).astype(jnp.bfloat16)                                    # (G, n, n)
    x_pad = jnp.zeros((N, LANE_PAD), jnp.float32).at[:, :INPUT_CHANNELS].set(x)
    x_blocks = x_pad.reshape(NUM_GRAPHS, n, LANE_PAD).astype(jnp.bfloat16)
    packed = pack_params(params)

    fwd = jax.jit(tgcn_forward, static_argnums=(3,))
    out = fwd(packed, x_blocks, a_blocks, OUTPUT_CHANNELS)
    out = jax.block_until_ready(out)

    ref_bf16 = tgcn_reference_bf16(params, x, A, P)
    ref_f32 = tgcn_reference_f32(params, x, A, P)

    assert out.shape == (NUM_GRAPHS, OUTPUT_CHANNELS)
    assert jnp.all(jnp.isfinite(out))
    assert jnp.allclose(out, ref_bf16, atol=2e-2, rtol=2e-2), (out, ref_bf16)
    assert jnp.allclose(out, ref_f32, atol=1e-1, rtol=1e-1), (out, ref_f32)
    print("KERNEL_OK")
</pallas_src>

<mosaic_0001>
module attributes {stable_mosaic.version = 11 : i64} {
  func.func @_tgcn_fused_kernel(%arg0: i32, %arg1: memref<1x16x16xbf16, #tpu.memory_space<vmem>>, %arg2: memref<1x16x128xbf16, #tpu.memory_space<vmem>>, %arg3: memref<128x128xbf16, #tpu.memory_space<vmem>>, %arg4: memref<128x128xbf16, #tpu.memory_space<vmem>>, %arg5: memref<1x128xf32, #tpu.memory_space<vmem>>, %arg6: memref<128x128xbf16, #tpu.memory_space<vmem>>, %arg7: memref<128x128xbf16, #tpu.memory_space<vmem>>, %arg8: memref<1x128xf32, #tpu.memory_space<vmem>>, %arg9: memref<128x128xbf16, #tpu.memory_space<vmem>>, %arg10: memref<128x128xbf16, #tpu.memory_space<vmem>>, %arg11: memref<1x128xf32, #tpu.memory_space<vmem>>, %arg12: memref<128x128xbf16, #tpu.memory_space<vmem>>, %arg13: memref<1x128xf32, #tpu.memory_space<vmem>>, %arg14: memref<1x8x128xf32, #tpu.memory_space<vmem>>) attributes {dimension_semantics = [#tpu.dimension_semantics<parallel>], iteration_bounds = array<i64: 2>, scalar_prefetch = 0 : i64, scratch_operands = 0 : i64, tpu.core_type = #tpu.core_type<tc>, window_params = [{transform_indices = @transform_0, window_bounds = array<i64: 1, 16, 16>}, {transform_indices = @transform_1, window_bounds = array<i64: 1, 16, 128>}, {pipeline_mode = #tpu.pipeline_mode<synchronous>, transform_indices = @transform_2, window_bounds = array<i64: 128, 128>}, {pipeline_mode = #tpu.pipeline_mode<synchronous>, transform_indices = @transform_3, window_bounds = array<i64: 128, 128>}, {pipeline_mode = #tpu.pipeline_mode<synchronous>, transform_indices = @transform_4, window_bounds = array<i64: 1, 128>}, {pipeline_mode = #tpu.pipeline_mode<synchronous>, transform_indices = @transform_5, window_bounds = array<i64: 128, 128>}, {pipeline_mode = #tpu.pipeline_mode<synchronous>, transform_indices = @transform_6, window_bounds = array<i64: 128, 128>}, {pipeline_mode = #tpu.pipeline_mode<synchronous>, transform_indices = @transform_7, window_bounds = array<i64: 1, 128>}, {pipeline_mode = #tpu.pipeline_mode<synchronous>, transform_indices = @transform_8, window_bounds = array<i64: 128, 128>}, {pipeline_mode = #tpu.pipeline_mode<synchronous>, transform_indices = @transform_9, window_bounds = array<i64: 128, 128>}, {pipeline_mode = #tpu.pipeline_mode<synchronous>, transform_indices = @transform_10, window_bounds = array<i64: 1, 128>}, {pipeline_mode = #tpu.pipeline_mode<synchronous>, transform_indices = @transform_11, window_bounds = array<i64: 128, 128>}, {pipeline_mode = #tpu.pipeline_mode<synchronous>, transform_indices = @transform_12, window_bounds = array<i64: 1, 128>}, {transform_indices = @transform_13, window_bounds = array<i64: 1, 8, 128>}]} {
    %c0 = arith.constant 0 : index
    %c0_0 = arith.constant 0 : index
    %c0_1 = arith.constant 0 : index
    %0 = vector.load %arg1[%c0, %c0_0, %c0_1] : memref<1x16x16xbf16, #tpu.memory_space<vmem>>, vector<1x16x16xbf16>
    %1 = vector.shape_cast %0 : vector<1x16x16xbf16> to vector<16x16xbf16>
    %c0_2 = arith.constant 0 : index
    %c0_3 = arith.constant 0 : index
    %c0_4 = arith.constant 0 : index
    %2 = vector.load %arg2[%c0_2, %c0_3, %c0_4] : memref<1x16x128xbf16, #tpu.memory_space<vmem>>, vector<1x16x128xbf16>
    %3 = vector.shape_cast %2 : vector<1x16x128xbf16> to vector<16x128xbf16>
    %cst = arith.constant dense<0.000000e+00> : vector<16x128xf32>
    %4 = tpu.matmul %1, %3, %cst {dimension_numbers = #tpu.dot_dimension_numbers<[1], [0], [0], [1], [0, 0, 1, 1], [], []>} : vector<16x16xbf16>, vector<16x128xbf16>, vector<16x128xf32> -> vector<16x128xf32>
    %5 = arith.truncf %4 : vector<16x128xf32> to vector<16x128xbf16>
    %c0_5 = arith.constant 0 : index
    %c0_6 = arith.constant 0 : index
    %6 = vector.load %arg3[%c0_5, %c0_6] : memref<128x128xbf16, #tpu.memory_space<vmem>>, vector<128x128xbf16>
    %cst_7 = arith.constant dense<0.000000e+00> : vector<16x128xf32>
    %7 = tpu.matmul %5, %6, %cst_7 {dimension_numbers = #tpu.dot_dimension_numbers<[1], [0], [0], [1], [0, 0, 1, 1], [], []>} : vector<16x128xbf16>, vector<128x128xbf16>, vector<16x128xf32> -> vector<16x128xf32>
    %c0_8 = arith.constant 0 : index
    %c0_9 = arith.constant 0 : index
    %8 = vector.load %arg4[%c0_8, %c0_9] : memref<128x128xbf16, #tpu.memory_space<vmem>>, vector<128x128xbf16>
    %cst_10 = arith.constant dense<0.000000e+00> : vector<16x128xf32>
    %9 = tpu.matmul %3, %8, %cst_10 {dimension_numbers = #tpu.dot_dimension_numbers<[1], [0], [0], [1], [0, 0, 1, 1], [], []>} : vector<16x128xbf16>, vector<128x128xbf16>, vector<16x128xf32> -> vector<16x128xf32>
    %10 = arith.addf %7, %9 : vector<16x128xf32>
    %c0_11 = arith.constant 0 : index
    %c0_12 = arith.constant 0 : index
    %11 = vector.load %arg5[%c0_11, %c0_12] : memref<1x128xf32, #tpu.memory_space<vmem>>, vector<1x128xf32>
    %12 = vector.broadcast %11 : vector<1x128xf32> to vector<16x128xf32>
    %13 = arith.addf %10, %12 : vector<16x128xf32>
    %cst_13 = arith.constant 0.000000e+00 : f32
    %14 = vector.broadcast %cst_13 : f32 to vector<16x128xf32>
    %15 = arith.maximumf %13, %14 : vector<16x128xf32>
    %16 = arith.truncf %15 : vector<16x128xf32> to vector<16x128xbf16>
    %cst_14 = arith.constant dense<0.000000e+00> : vector<16x128xf32>
    %17 = tpu.matmul %1, %16, %cst_14 {dimension_numbers = #tpu.dot_dimension_numbers<[1], [0], [0], [1], [0, 0, 1, 1], [], []>} : vector<16x16xbf16>, vector<16x128xbf16>, vector<16x128xf32> -> vector<16x128xf32>
    %18 = arith.truncf %17 : vector<16x128xf32> to vector<16x128xbf16>
    %c0_15 = arith.constant 0 : index
    %c0_16 = arith.constant 0 : index
    %19 = vector.load %arg6[%c0_15, %c0_16] : memref<128x128xbf16, #tpu.memory_space<vmem>>, vector<128x128xbf16>
    %cst_17 = arith.constant dense<0.000000e+00> : vector<16x128xf32>
    %20 = tpu.matmul %18, %19, %cst_17 {dimension_numbers = #tpu.dot_dimension_numbers<[1], [0], [0], [1], [0, 0, 1, 1], [], []>} : vector<16x128xbf16>, vector<128x128xbf16>, vector<16x128xf32> -> vector<16x128xf32>
    %c0_18 = arith.constant 0 : index
    %c0_19 = arith.constant 0 : index
    %21 = vector.load %arg7[%c0_18, %c0_19] : memref<128x128xbf16, #tpu.memory_space<vmem>>, vector<128x128xbf16>
    %cst_20 = arith.constant dense<0.000000e+00> : vector<16x128xf32>
    %22 = tpu.matmul %16, %21, %cst_20 {dimension_numbers = #tpu.dot_dimension_numbers<[1], [0], [0], [1], [0, 0, 1, 1], [], []>} : vector<16x128xbf16>, vector<128x128xbf16>, vector<16x128xf32> -> vector<16x128xf32>
    %23 = arith.addf %20, %22 : vector<16x128xf32>
    %c0_21 = arith.constant 0 : index
    %c0_22 = arith.constant 0 : index
    %24 = vector.load %arg8[%c0_21, %c0_22] : memref<1x128xf32, #tpu.memory_space<vmem>>, vector<1x128xf32>
    %25 = vector.broadcast %24 : vector<1x128xf32> to vector<16x128xf32>
    %26 = arith.addf %23, %25 : vector<16x128xf32>
    %cst_23 = arith.constant 0.000000e+00 : f32
    %27 = vector.broadcast %cst_23 : f32 to vector<16x128xf32>
    %28 = arith.maximumf %26, %27 : vector<16x128xf32>
    %29 = arith.truncf %28 : vector<16x128xf32> to vector<16x128xbf16>
    %cst_24 = arith.constant dense<0.000000e+00> : vector<16x128xf32>
    %30 = tpu.matmul %1, %29, %cst_24 {dimension_numbers = #tpu.dot_dimension_numbers<[1], [0], [0], [1], [0, 0, 1, 1], [], []>} : vector<16x16xbf16>, vector<16x128xbf16>, vector<16x128xf32> -> vector<16x128xf32>
    %31 = arith.truncf %30 : vector<16x128xf32> to vector<16x128xbf16>
    %c0_25 = arith.constant 0 : index
    %c0_26 = arith.constant 0 : index
    %32 = vector.load %arg9[%c0_25, %c0_26] : memref<128x128xbf16, #tpu.memory_space<vmem>>, vector<128x128xbf16>
    %cst_27 = arith.constant dense<0.000000e+00> : vector<16x128xf32>
    %33 = tpu.matmul %31, %32, %cst_27 {dimension_numbers = #tpu.dot_dimension_numbers<[1], [0], [0], [1], [0, 0, 1, 1], [], []>} : vector<16x128xbf16>, vector<128x128xbf16>, vector<16x128xf32> -> vector<16x128xf32>
    %c0_28 = arith.constant 0 : index
    %c0_29 = arith.constant 0 : index
    %34 = vector.load %arg10[%c0_28, %c0_29] : memref<128x128xbf16, #tpu.memory_space<vmem>>, vector<128x128xbf16>
    %cst_30 = arith.constant dense<0.000000e+00> : vector<16x128xf32>
    %35 = tpu.matmul %29, %34, %cst_30 {dimension_numbers = #tpu.dot_dimension_numbers<[1], [0], [0], [1], [0, 0, 1, 1], [], []>} : vector<16x128xbf16>, vector<128x128xbf16>, vector<16x128xf32> -> vector<16x128xf32>
    %36 = arith.addf %33, %35 : vector<16x128xf32>
    %c0_31 = arith.constant 0 : index
    %c0_32 = arith.constant 0 : index
    %37 = vector.load %arg11[%c0_31, %c0_32] : memref<1x128xf32, #tpu.memory_space<vmem>>, vector<1x128xf32>
    %38 = vector.broadcast %37 : vector<1x128xf32> to vector<16x128xf32>
    %39 = arith.addf %36, %38 : vector<16x128xf32>
    %cst_33 = arith.constant dense<0.000000e+00> : vector<128xf32>
    %40 = vector.multi_reduction <add>, %39, %cst_33 [0] : vector<16x128xf32> to vector<128xf32>
    %41 = vector.shape_cast %40 : vector<128xf32> to vector<1x128xf32>
    %cst_34 = arith.constant 1.600000e+01 : f32
    %42 = vector.broadcast %cst_34 : f32 to vector<1x128xf32>
    %43 = arith.divf %41, %42 : vector<1x128xf32>
    %44 = arith.truncf %43 : vector<1x128xf32> to vector<1x128xbf16>
    %c0_35 = arith.constant 0 : index
    %c0_36 = arith.constant 0 : index
    %45 = vector.load %arg12[%c0_35, %c0_36] : memref<128x128xbf16, #tpu.memory_space<vmem>>, vector<128x128xbf16>
    %cst_37 = arith.constant dense<0.000000e+00> : vector<1x128xf32>
    %46 = tpu.matmul %44, %45, %cst_37 {dimension_numbers = #tpu.dot_dimension_numbers<[1], [0], [0], [1], [0, 0, 1, 1], [], []>} : vector<1x128xbf16>, vector<128x128xbf16>, vector<1x128xf32> -> vector<1x128xf32>
    %c0_38 = arith.constant 0 : index
    %c0_39 = arith.constant 0 : index
    %47 = vector.load %arg13[%c0_38, %c0_39] : memref<1x128xf32, #tpu.memory_space<vmem>>, vector<1x128xf32>
    %48 = arith.addf %46, %47 : vector<1x128xf32>
    %49 = vector.shape_cast %48 : vector<1x128xf32> to vector<1x128xf32>
    %50 = vector.broadcast %49 : vector<1x128xf32> to vector<8x128xf32>
    %c0_40 = arith.constant 0 : index
    %c0_41 = arith.constant 0 : index
    %c0_42 = arith.constant 0 : index
    %51 = vector.load %arg14[%c0_40, %c0_41, %c0_42] : memref<1x8x128xf32, #tpu.memory_space<vmem>>, vector<1x8x128xf32>
    %52 = vector.shape_cast %51 : vector<1x8x128xf32> to vector<8x128xf32>
    %53 = vector.shape_cast %50 : vector<8x128xf32> to vector<1x8x128xf32>
    tpu.vector_store %arg14[%c0_40, %c0_41, %c0_42], %53 {strides = array<i32>} : memref<1x8x128xf32, #tpu.memory_space<vmem>>, vector<1x8x128xf32>,
    return
  }
  func.func @transform_0(%arg0: i32) -> (i32, i32, i32) {
    %c0_i32 = arith.constant 0 : i32
    %c0_i32_0 = arith.constant 0 : i32
    %c0_i32_1 = arith.constant 0 : i32
    return %arg0, %c0_i32, %c0_i32_0 : i32, i32, i32
  }
  func.func @transform_1(%arg0: i32) -> (i32, i32, i32) {
    %c0_i32 = arith.constant 0 : i32
    %c0_i32_0 = arith.constant 0 : i32
    %c0_i32_1 = arith.constant 0 : i32
    return %arg0, %c0_i32, %c0_i32_0 : i32, i32, i32
  }
  func.func @transform_2(%arg0: i32) -> (i32, i32) {
    %c0_i32 = arith.constant 0 : i32
    %c0_i32_0 = arith.constant 0 : i32
    %c0_i32_1 = arith.constant 0 : i32
    return %c0_i32, %c0_i32_0 : i32, i32
  }
  func.func @transform_3(%arg0: i32) -> (i32, i32) {
    %c0_i32 = arith.constant 0 : i32
    %c0_i32_0 = arith.constant 0 : i32
    %c0_i32_1 = arith.constant 0 : i32
    return %c0_i32, %c0_i32_0 : i32, i32
  }
  func.func @transform_4(%arg0: i32) -> (i32, i32) {
    %c0_i32 = arith.constant 0 : i32
    %c0_i32_0 = arith.constant 0 : i32
    %c0_i32_1 = arith.constant 0 : i32
    return %c0_i32, %c0_i32_0 : i32, i32
  }
  func.func @transform_5(%arg0: i32) -> (i32, i32) {
    %c0_i32 = arith.constant 0 : i32
    %c0_i32_0 = arith.constant 0 : i32
    %c0_i32_1 = arith.constant 0 : i32
    return %c0_i32, %c0_i32_0 : i32, i32
  }
  func.func @transform_6(%arg0: i32) -> (i32, i32) {
    %c0_i32 = arith.constant 0 : i32
    %c0_i32_0 = arith.constant 0 : i32
    %c0_i32_1 = arith.constant 0 : i32
    return %c0_i32, %c0_i32_0 : i32, i32
  }
  func.func @transform_7(%arg0: i32) -> (i32, i32) {
    %c0_i32 = arith.constant 0 : i32
    %c0_i32_0 = arith.constant 0 : i32
    %c0_i32_1 = arith.constant 0 : i32
    return %c0_i32, %c0_i32_0 : i32, i32
  }
  func.func @transform_8(%arg0: i32) -> (i32, i32) {
    %c0_i32 = arith.constant 0 : i32
    %c0_i32_0 = arith.constant 0 : i32
    %c0_i32_1 = arith.constant 0 : i32
    return %c0_i32, %c0_i32_0 : i32, i32
  }
  func.func @transform_9(%arg0: i32) -> (i32, i32) {
    %c0_i32 = arith.constant 0 : i32
    %c0_i32_0 = arith.constant 0 : i32
    %c0_i32_1 = arith.constant 0 : i32
    return %c0_i32, %c0_i32_0 : i32, i32
  }
  func.func @transform_10(%arg0: i32) -> (i32, i32) {
    %c0_i32 = arith.constant 0 : i32
    %c0_i32_0 = arith.constant 0 : i32
    %c0_i32_1 = arith.constant 0 : i32
    return %c0_i32, %c0_i32_0 : i32, i32
  }
  func.func @transform_11(%arg0: i32) -> (i32, i32) {
    %c0_i32 = arith.constant 0 : i32
    %c0_i32_0 = arith.constant 0 : i32
    %c0_i32_1 = arith.constant 0 : i32
    return %c0_i32, %c0_i32_0 : i32, i32
  }
  func.func @transform_12(%arg0: i32) -> (i32, i32) {
    %c0_i32 = arith.constant 0 : i32
    %c0_i32_0 = arith.constant 0 : i32
    %c0_i32_1 = arith.constant 0 : i32
    return %c0_i32, %c0_i32_0 : i32, i32
  }
  func.func @transform_13(%arg0: i32) -> (i32, i32, i32) {
    %c0_i32 = arith.constant 0 : i32
    %c0_i32_0 = arith.constant 0 : i32
    %c0_i32_1 = arith.constant 0 : i32
    return %arg0, %c0_i32, %c0_i32_0 : i32, i32, i32
  }
}

</mosaic_0001>

<bundles_post_ra>
// kernel: tgcn_forward.1
= control target key start
LH: loop header
LB: loop body
LE: loop exit
PB: predicated region body
PF: predicated region fallthrough
CT: control target
= control target key end

     0   :  { %s2885_s0 = inlined_call_operand.vmem [shape: bf16[2,16,16], index: 0, kind: input, shape index: {}]   ;;  %s2886_s1 = inlined_call_operand.vmem [shape: bf16[2,16,128], index: 1, kind: input, shape index: {}]   ;;  %s2887_s2 = inlined_call_operand.hbm [shape: bf16[128,128], index: 2, kind: input, shape index: {}]   ;;  %s2888_s3 = inlined_call_operand.hbm [shape: bf16[128,128], index: 3, kind: input, shape index: {}]   ;;  %s2889_s4 = inlined_call_operand.hbm [shape: f32[1,128], index: 4, kind: input, shape index: {}]   ;;  %s2890_s5 = inlined_call_operand.hbm [shape: bf16[128,128], index: 5, kind: input, shape index: {}]   ;;  %s2891_s6 = inlined_call_operand.hbm [shape: bf16[128,128], index: 6, kind: input, shape index: {}]   ;;  %s2892_s7 = inlined_call_operand.vmem [shape: f32[1,128], index: 7, kind: input, shape index: {}]   ;;  %s2893_s8 = inlined_call_operand.hbm [shape: bf16[128,128], index: 8, kind: input, shape index: {}]   ;;  %s2894_s9 = inlined_call_operand.hbm [shape: bf16[128,128], index: 9, kind: input, shape index: {}]   ;;  %s2895_s10 = inlined_call_operand.vmem [shape: f32[1,128], index: 10, kind: input, shape index: {}]   ;;  %s2896_s11 = inlined_call_operand.hbm [shape: bf16[128,128], index: 11, kind: input, shape index: {}]   ;;  %s2897_s12 = inlined_call_operand.hbm [shape: f32[1,128], index: 12, kind: input, shape index: {}]   ;;  %s2898_s13 = inlined_call_operand.vmem [shape: f32[2,8,128], index: 13, kind: output, shape index: {}]  }
   0x1   :  { %2902 = sst [smem:[#allocation22_spill]] %s2895_s10 }
   0x2   :  { %2903 = sst [smem:[#allocation23_spill]] %s2898_s13 }
   0x3   :  { %18 = vsyncpa [#allocation3], 0 }
   0x4   :  { %19 = vsyncpa [#allocation5], 0 }
   0x5   :  { %20 = vsyncpa [#allocation8], 0 }
   0x6   :  { %21 = vsyncpa [#allocation11], 0 }
   0x7   :  { %22 = vsyncpa [#allocation14], 0  ;;  %s2515_s25 = smov 0  }
   0x8 LB: > { %2904 = sst [smem:[#allocation21_spill]] %s2430_s25  ;;  %s2521_s26 = sadd.s32 4294967295, %s2430_s25   ;;  %s2430_s25 = sphi %s2515_s25, %s28_s25  }
   0x9   : > { %p1670_p0 = scmp.ge.s32.totalorder %s2430_s25, 1  ;;  %p342_p1 = scmp.lt.s32.totalorder %s2430_s25, 3 }
   0xa   : > { %p2900_p2 = scmp.eq.s32.totalorder %s2521_s26, 0  ;;  %s2432_s28 = smov [#allocation4]  }
   0xb   : > { %p2526_p3 = pnand %p1670_p0, %p342_p1  ;;  %s367_s29 = sshll.u32 %s2432_s28, 4  ;;  %s2530_s29 = int_to_ptr.vmem [resolvable:$true] %s367_s29 }
   0xc   : > { %s2433_s30 = smov [#allocation7]   ;;  %s2434_s16 = smov [#allocation10]  }
   0xd   : > { %s2905_s27 = scalar_select %p2526_p3, 1, 0 }
   0xe   : > { %p2027_p4 = pneg %p2526_p3  ;;  %s391_s14 = sshll.u32 %s2433_s30, 4  ;;  %s2534_s14 = int_to_ptr.vmem [resolvable:$true] %s391_s14 }
   0xf   : > { %s420_s17 = sshll.u32 %s2434_s16, 4  ;;  %s2435_s18 = smov [#allocation13]   ;;  %s2542_s17 = int_to_ptr.vmem [resolvable:$true] %s420_s17 }
  0x10   : > { %p2538_p5 = pnand %p2900_p2, %p2027_p4  ;;  %s2544_s19 = sshll.u32 %s2435_s18, 4  ;;  %s450_s19 = int_to_ptr.vmem [resolvable:$true] %s2544_s19 }
  0x11   : > { %s2152_s22 = scalar_lea.hbm %s2888_s3, 1024 }
  0x12   : > { %p2153_p6 = scmp.ne.s32.totalorder %s2888_s3, %s2152_s22  ;;  %p2554_p7 = pneg %p2538_p5 }
  0x13   : > { %p2159_p10 = scmp.lt.u32.totalorder %s2152_s22, %s2888_s3 }
  0x14   : > { %p2155_p8 = pnand %p2554_p7, %p2153_p6 }
  0x16   : > { %p2156_p9 = pneg %p2155_p8 }
  0x18   : > { %p2161_p11 = pnand %p2159_p10, %p2156_p9 }
  0x1a   : > { %2164 = shalt.err (!%p2161_p11)
}
  0x1b   : > { %s2165_s18 = scalar_lea.vmem %s2530_s29, 1024  ;;  %p2173_p1 = scmp.lt.s32.totalorder %s2530_s29, %s2530_s29 }
  0x1c   : > { %p2166_p12 = scmp.ne.s32.totalorder %s2530_s29, %s2165_s18  ;;  %p2174_p4 = scmp.lt.s32.totalorder %s2165_s18, %s2165_s18 }
  0x1e   : > { %p2168_p13 = pnand %p2166_p12, %p2554_p7  ;;  %p2175_p6 = por %p2174_p4, %p2173_p1 }
  0x20   : > { %p2169_p0 = pneg %p2168_p13 }
  0x22   : > { %p2176_p8 = pnand %p2175_p6, %p2169_p0 }
  0x24   : > { %2179 = shalt.err (!%p2176_p8)
}
  0x25   : > { %s2436_s20 = smov 64   ;;  %s2437_s21 = smov 4  }
  0x26   : > { %2033 = dma.hbm_to_vmem [thread:$0]  (!%p2538_p5), %s2888_s3, 1024, %s2530_s29, [#allocation5], %s2436_s20, %s2436_s20, %s2437_s21  }
  0x27   : > { %s2180_s16 = scalar_lea.hbm %s2890_s5, 1024 }
  0x28   : > { %p2181_p9 = scmp.ne.s32.totalorder %s2890_s5, %s2180_s16  ;;  %p2187_p12 = scmp.lt.u32.totalorder %s2180_s16, %s2890_s5 }
  0x2a   : > { %p2183_p10 = pnand %p2181_p9, %p2554_p7 }
  0x2c   : > { %p2184_p11 = pneg %p2183_p10 }
  0x2e   : > { %p2189_p13 = pnand %p2187_p12, %p2184_p11 }
  0x30   : > { %2192 = shalt.err (!%p2189_p13)
}
  0x31   : > { %s2193_s29 = scalar_lea.vmem %s2534_s14, 1024  ;;  %p2201_p6 = scmp.lt.s32.totalorder %s2534_s14, %s2534_s14 }
  0x32   : > { %p2194_p0 = scmp.ne.s32.totalorder %s2534_s14, %s2193_s29  ;;  %p2202_p8 = scmp.lt.s32.totalorder %s2193_s29, %s2193_s29 }
  0x34   : > { %p2196_p1 = pnand %p2194_p0, %p2554_p7  ;;  %p2203_p9 = por %p2202_p8, %p2201_p6 }
  0x36   : > { %p2197_p4 = pneg %p2196_p1 }
  0x38   : > { %p2204_p10 = pnand %p2203_p9, %p2197_p4 }
  0x3a   : > { %2207 = shalt.err (!%p2204_p10)
}
  0x3b   : > { %2039 = dma.hbm_to_vmem [thread:$0]  (!%p2538_p5), %s2890_s5, 1024, %s2534_s14, [#allocation8], %s2436_s20, %s2436_s20, %s2437_s21  }
  0x3c   : > { %s2208_s23 = scalar_lea.hbm %s2893_s8, 1024 }
  0x3d   : > { %p2209_p11 = scmp.ne.s32.totalorder %s2893_s8, %s2208_s23  ;;  %p2215_p0 = scmp.lt.u32.totalorder %s2208_s23, %s2893_s8 }
  0x3f   : > { %p2211_p12 = pnand %p2209_p11, %p2554_p7 }
  0x41   : > { %p2212_p13 = pneg %p2211_p12 }
  0x43   : > { %p2217_p1 = pnand %p2215_p0, %p2212_p13 }
  0x45   : > { %2220 = shalt.err (!%p2217_p1)
}
  0x46   : > { %s2221_s14 = scalar_lea.vmem %s2542_s17, 1024  ;;  %p2229_p9 = scmp.lt.s32.totalorder %s2542_s17, %s2542_s17 }
  0x47   : > { %p2222_p4 = scmp.ne.s32.totalorder %s2542_s17, %s2221_s14  ;;  %p2230_p10 = scmp.lt.s32.totalorder %s2221_s14, %s2221_s14 }
  0x49   : > { %p2224_p6 = pnand %p2222_p4, %p2554_p7  ;;  %p2231_p11 = por %p2230_p10, %p2229_p9 }
  0x4b   : > { %p2225_p8 = pneg %p2224_p6 }
  0x4d   : > { %p2232_p12 = pnand %p2231_p11, %p2225_p8 }
  0x4f   : > { %2235 = shalt.err (!%p2232_p12)
}
  0x50   : > { %2045 = dma.hbm_to_vmem [thread:$0]  (!%p2538_p5), %s2893_s8, 1024, %s2542_s17, [#allocation11], %s2436_s20, %s2436_s20, %s2437_s21  }
  0x51   : > { %s2236_s22 = scalar_lea.hbm %s2896_s11, 1024 }
  0x52   : > { %p2237_p13 = scmp.ne.s32.totalorder %s2896_s11, %s2236_s22  ;;  %p2243_p4 = scmp.lt.u32.totalorder %s2236_s22, %s2896_s11 }
  0x54   : > { %p2239_p0 = pnand %p2237_p13, %p2554_p7 }
  0x56   : > { %p2240_p1 = pneg %p2239_p0 }
  0x58   : > { %p2245_p6 = pnand %p2243_p4, %p2240_p1 }
  0x5a   : > { %2248 = shalt.err (!%p2245_p6)
}
  0x5b   : > { %s2249_s18 = scalar_lea.vmem %s450_s19, 1024  ;;  %p2257_p11 = scmp.lt.s32.totalorder %s450_s19, %s450_s19 }
  0x5c   : > { %p2250_p8 = scmp.ne.s32.totalorder %s450_s19, %s2249_s18  ;;  %p2258_p12 = scmp.lt.s32.totalorder %s2249_s18, %s2249_s18 }
  0x5e   : > { %p2252_p9 = pnand %p2250_p8, %p2554_p7  ;;  %p2259_p2 = por %p2258_p12, %p2257_p11 }
  0x60   : > { %p2253_p10 = pneg %p2252_p9 }
  0x62   : > { %p2260_p3 = pnand %p2259_p2, %p2253_p10 }
  0x64   : > { %2263 = shalt.err (!%p2260_p3)
}
  0x65   : > { %2051 = dma.hbm_to_vmem [thread:$0]  (!%p2538_p5), %s2896_s11, 1024, %s450_s19, [#allocation14], %s2436_s20, %s2436_s20, %s2437_s21  }
  0x66   : > { %s2438_s29 = smov [#allocation2]   ;;  %s2439_s13 = smov [#allocation6]  }
  0x67   : > { %s354_s10 = sshll.u32 %s2438_s29, 4  ;;  %s381_s25 = sshll.u32 %s2439_s13, 4  ;;  %s355_s10 = int_to_ptr.vmem [resolvable:$true] %s354_s10  ;;  %s382_s25 = int_to_ptr.vmem [resolvable:$true] %s381_s25 }
  0x68   : > { %s2264_s24 = scalar_lea.hbm %s2887_s2, 1024 }
  0x69   : > { %p2265_p2 = scmp.ne.s32.totalorder %s2887_s2, %s2264_s24  ;;  %p2271_p0 = scmp.lt.u32.totalorder %s2264_s24, %s2887_s2 }
  0x6b   : > { %p2267_p3 = pnand %p2265_p2, %p2554_p7 }
  0x6d   : > { %p2268_p13 = pneg %p2267_p3 }
  0x6f   : > { %p2273_p1 = pnand %p2271_p0, %p2268_p13 }
  0x71   : > { %2276 = shalt.err (!%p2273_p1)
}
  0x72   : > { %s2277_s19 = scalar_lea.vmem %s355_s10, 1024  ;;  %p2285_p9 = scmp.lt.s32.totalorder %s355_s10, %s355_s10 }
  0x73   : > { %p2278_p4 = scmp.ne.s32.totalorder %s355_s10, %s2277_s19  ;;  %p2286_p10 = scmp.lt.s32.totalorder %s2277_s19, %s2277_s19 }
  0x75   : > { %p2280_p6 = pnand %p2278_p4, %p2554_p7  ;;  %p2287_p11 = por %p2286_p10, %p2285_p9 }
  0x77   : > { %p2281_p8 = pneg %p2280_p6 }
  0x79   : > { %p2288_p12 = pnand %p2287_p11, %p2281_p8 }
  0x7b   : > { %2291 = shalt.err (!%p2288_p12)
}
  0x7c   : > { %2030 = dma.hbm_to_vmem [thread:$0]  (!%p2538_p5), %s2887_s2, 1024, %s355_s10, [#allocation3], %s2436_s20, %s2436_s20, %s2437_s21  }
  0x7d   : > { %s2292_s23 = scalar_lea.hbm %s2889_s4, 16 }
  0x7e   : > { %p2293_p2 = scmp.ne.s32.totalorder %s2889_s4, %s2292_s23  ;;  %p2299_p0 = scmp.lt.u32.totalorder %s2292_s23, %s2889_s4 }
  0x80   : > { %p2295_p3 = pnand %p2293_p2, %p2554_p7 }
  0x82   : > { %p2296_p13 = pneg %p2295_p3 }
  0x84   : > { %p2301_p1 = pnand %p2299_p0, %p2296_p13 }
  0x86   : > { %2304 = shalt.err (!%p2301_p1)
}
  0x87   : > { %s2305_s17 = scalar_lea.vmem %s382_s25, 16  ;;  %s2312_s10 = scalar_lea.vmem %s382_s25, 32 }
  0x88   : > { %p2306_p4 = scmp.ne.s32.totalorder %s382_s25, %s2305_s17  ;;  %p2313_p9 = scmp.lt.s32.totalorder %s382_s25, %s382_s25 }
  0x89   : > { %p2314_p10 = scmp.lt.s32.totalorder %s2312_s10, %s2305_s17 }
  0x8a   : > { %p2308_p6 = pnand %p2306_p4, %p2554_p7 }
  0x8b   : > { %p2315_p11 = por %p2314_p10, %p2313_p9 }
  0x8c   : > { %p2309_p8 = pneg %p2308_p6 }
  0x8e   : > { %p2316_p12 = pnand %p2315_p11, %p2309_p8 }
  0x90   : > { %2319 = shalt.err (!%p2316_p12)
}
  0x91   : > { %2036 = dma.hbm_to_vmem [thread:$0]  (!%p2538_p5), %s2889_s4, 16, %s382_s25, [#allocation5]  }
  0x92   : > { %s2440_s29 = smov [#allocation9]   ;;  %s2441_s22 = smov [#allocation12]  }
  0x93   : > { %s404_s13 = sshll.u32 %s2440_s29, 4  ;;  %s433_s23 = sshll.u32 %s2441_s22, 4  ;;  %s405_s13 = int_to_ptr.vmem [resolvable:$true] %s404_s13  ;;  %s434_s23 = int_to_ptr.vmem [resolvable:$true] %s433_s23 }
  0x94   : > { %s2320_s16 = scalar_lea.hbm %s2891_s6, 1024 }
  0x95   : > { %p2321_p2 = scmp.ne.s32.totalorder %s2891_s6, %s2320_s16  ;;  %p2327_p0 = scmp.lt.u32.totalorder %s2320_s16, %s2891_s6 }
  0x97   : > { %p2323_p3 = pnand %p2321_p2, %p2554_p7 }
  0x99   : > { %p2324_p13 = pneg %p2323_p3 }
  0x9b   : > { %p2329_p1 = pnand %p2327_p0, %p2324_p13 }
  0x9d   : > { %2332 = shalt.err (!%p2329_p1)
}
  0x9e   : > { %s2333_s25 = scalar_lea.vmem %s405_s13, 1024  ;;  %p2341_p9 = scmp.lt.s32.totalorder %s405_s13, %s405_s13 }
  0x9f   : > { %p2334_p4 = scmp.ne.s32.totalorder %s405_s13, %s2333_s25  ;;  %p2342_p10 = scmp.lt.s32.totalorder %s2333_s25, %s2333_s25 }
  0xa1   : > { %p2336_p6 = pnand %p2334_p4, %p2554_p7  ;;  %p2343_p11 = por %p2342_p10, %p2341_p9 }
  0xa3   : > { %p2337_p8 = pneg %p2336_p6 }
  0xa5   : > { %p2344_p12 = pnand %p2343_p11, %p2337_p8 }
  0xa7   : > { %2347 = shalt.err (!%p2344_p12)
}
  0xa8   : > { %2042 = dma.hbm_to_vmem [thread:$0]  (!%p2538_p5), %s2891_s6, 1024, %s405_s13, [#allocation8], %s2436_s20, %s2436_s20, %s2437_s21  }
  0xa9   : > { %s2348_s30 = scalar_lea.hbm %s2894_s9, 1024 }
  0xaa   : > { %p2349_p2 = scmp.ne.s32.totalorder %s2894_s9, %s2348_s30  ;;  %p2355_p0 = scmp.lt.u32.totalorder %s2348_s30, %s2894_s9 }
  0xac   : > { %p2351_p3 = pnand %p2349_p2, %p2554_p7 }
  0xae   : > { %p2352_p13 = pneg %p2351_p3 }
  0xb0   : > { %p2357_p1 = pnand %p2355_p0, %p2352_p13 }
  0xb2   : > { %2360 = shalt.err (!%p2357_p1)
}
  0xb3   : > { %s2361_s19 = scalar_lea.vmem %s434_s23, 1024  ;;  %p2369_p9 = scmp.lt.s32.totalorder %s434_s23, %s434_s23 }
  0xb4   : > { %p2362_p4 = scmp.ne.s32.totalorder %s434_s23, %s2361_s19  ;;  %p2370_p10 = scmp.lt.s32.totalorder %s2361_s19, %s2361_s19 }
  0xb6   : > { %p2364_p6 = pnand %p2362_p4, %p2554_p7  ;;  %p2371_p11 = por %p2370_p10, %p2369_p9 }
  0xb8   : > { %p2365_p8 = pneg %p2364_p6 }
  0xba   : > { %p2372_p12 = pnand %p2371_p11, %p2365_p8 }
  0xbc   : > { %2375 = shalt.err (!%p2372_p12)
}
  0xbd   : > { %2048 = dma.hbm_to_vmem [thread:$0]  (!%p2538_p5), %s2894_s9, 1024, %s434_s23, [#allocation11], %s2436_s20, %s2436_s20, %s2437_s21  }
  0xbe   : > { %s2442_s14 = smov [#allocation15]   ;;  %s2376_s30 = scalar_lea.hbm %s2897_s12, 16 }
  0xbf   : > { %s463_s29 = sshll.u32 %s2442_s14, 4  ;;  %p2377_p2 = scmp.ne.s32.totalorder %s2897_s12, %s2376_s30  ;;  %s464_s29 = int_to_ptr.vmem [resolvable:$true] %s463_s29 }
  0xc0   : > { %p2383_p0 = scmp.lt.u32.totalorder %s2376_s30, %s2897_s12 }
  0xc1   : > { %p2379_p3 = pnand %p2377_p2, %p2554_p7 }
  0xc3   : > { %p2380_p13 = pneg %p2379_p3 }
  0xc5   : > { %p2385_p1 = pnand %p2383_p0, %p2380_p13 }
  0xc7   : > { %2388 = shalt.err (!%p2385_p1)
}
  0xc8   : > { %s2389_s20 = scalar_lea.vmem %s464_s29, 16  ;;  %s2396_s21 = scalar_lea.vmem %s464_s29, 32 }
  0xc9   : > { %p2390_p4 = scmp.ne.s32.totalorder %s464_s29, %s2389_s20  ;;  %p2397_p9 = scmp.lt.s32.totalorder %s464_s29, %s464_s29 }
  0xca   : > { %p2398_p10 = scmp.lt.s32.totalorder %s2396_s21, %s2389_s20 }
  0xcb   : > { %p2392_p6 = pnand %p2390_p4, %p2554_p7 }
  0xcc   : > { %p2399_p11 = por %p2398_p10, %p2397_p9 }
  0xcd   : > { %p2393_p8 = pneg %p2392_p6 }
  0xcf   : > { %p2400_p12 = pnand %p2399_p11, %p2393_p8 }
  0xd1   : > { %2403 = shalt.err (!%p2400_p12)
}
  0xd2   : > { %2054 = dma.hbm_to_vmem [thread:$0]  (!%p2538_p5), %s2897_s12, 16, %s464_s29, [#allocation14]  }
  0xd3   : > { %p2908_p2 = scmp.ne.s32.totalorder %s2905_s27, 0 }
  0xd4   : > { %p2909_p3 = scmp.eq.s32.totalorder (!%p2908_p2), %s2521_s26, 0 }
  0xd5   : > { %492 = sbr.rel (%p2908_p2) target bundleno = 1794 (0x702), region = 72 }
  0xdc   : > { %2409 = dma.done.wait (%p2909_p3), [#allocation3], 1024   ;;  %p2910_p7 = pmov %p2909_p3 }
  0xdd   : > { %p2911_p13 = pmov %p2909_p3 }
  0xde   : > { %2411 = vsyncadd (%p2910_p7), [#allocation3], 4294966272 }
  0xdf   : > { %2413 = dma.done.wait (%p2911_p13), [#allocation5], 1040   ;;  %p2912_p0 = pmov %p2909_p3 }
  0xe1   : > { %2415 = vsyncadd (%p2912_p0), [#allocation5], 4294966256  ;;  %p2913_p1 = pmov %p2912_p0 }
  0xe2   : > { %p2914_p5 = pmov %p2912_p0 }
  0xe3   : > { %2417 = dma.done.wait (%p2913_p1), [#allocation8], 2048  }
  0xe4   : > { %2419 = vsyncadd (%p2914_p5), [#allocation8], 4294965248  ;;  %p2915_p4 = pmov %p2912_p0 }
  0xe5   : > { %p2916_p6 = pmov %p2912_p0 }
  0xe6   : > { %2421 = dma.done.wait (%p2915_p4), [#allocation11], 2048  }
  0xe7   : > { %2423 = vsyncadd (%p2916_p6), [#allocation11], 4294965248  ;;  %p2917_p8 = pmov %p2912_p0 }
  0xe8   : > { %p2918_p9 = pmov %p2912_p0 }
  0xe9   : > { %2425 = dma.done.wait (%p2917_p8), [#allocation14], 1040  }
  0xea   : > { %2427 = vsyncadd (%p2918_p9), [#allocation14], 4294966256  ;;  %p572_p10 = scmp.lt.s32.totalorder %s2521_s26, 1  ;;  %v2443_v0 = vmov 0.0   ;;  %vm2444_vm0 = vmmov 0   ;;  %vm602_vm1 = vcmask 130048  }
  0xeb   : > { %1833 = vmatprep.subr.bf16.mxu0 %v2443_v0  ;;  %1835 = vmatprep.mubr.msk.bf16.mxu0 %vm2444_vm0, %v2443_v0  ;;  %v2096_v3 = vld [vmem:[#allocation4] sm:$0xff]   ;;  %v2098_v5 = vld [vmem:[#allocation4 + $0x8] sm:$0xff]   ;;  %v2100_v7 = vld [vmem:[#allocation4 + $0x10] sm:$0xff]   ;;  %s2919_s16 = sld [smem:[#allocation22_spill]]  ;;  %s2920_s10 = sld [smem:[#allocation23_spill]] }
  0xec   : > { %s2923_s26 = smov (!%p572_p10, %s2521_s26), 1  ;;  %1839 = vmatprep.subr.bf16.mxu1 %v2443_v0  ;;  %1855 = vmatprep.mubr.msk.bf16.mxu1 %vm2444_vm0, %v2443_v0  ;;  %v2097_v4 = vld [vmem:[#allocation2] sm:$0xff]   ;;  %v2099_v6 = vld [vmem:[#allocation2 + $0x8] sm:$0xff]   ;;  %v2101_v8 = vld [vmem:[#allocation2 + $0x10] sm:$0xff]  }
  0xed   : > { %s2781_s27 = sshll.u32 %s2923_s26, 3  ;;  %1840 = vmatpush3.bf16.msra.mxu1 %v2096_v3  ;;  %v2102_v9 = vld [vmem:[#allocation4 + $0x18] sm:$0xff]   ;;  %v2104_v11 = vld [vmem:[#allocation4 + $0x20] sm:$0xff]   ;;  %v2106_v13 = vld [vmem:[#allocation4 + $0x28] sm:$0xff]  }
  0xee   : > { %s576_s13 = scalar_lea.vmem %s2885_s0, %s2781_s27  ;;  %s581_s29 = scalar_lea.vmem %s2886_s1, %s2781_s27  ;;  %1841 = vmatprep.subr.bf16.mxu1 %v2443_v0  ;;  %v2103_v10 = vld [vmem:[#allocation2 + $0x18] sm:$0xff]   ;;  %v2105_v12 = vld [vmem:[#allocation2 + $0x20] sm:$0xff]   ;;  %v2107_v14 = vld [vmem:[#allocation2 + $0x28] sm:$0xff]  }
  0xef   : > { %v2094_v1 = vld [vmem:[%s581_s29] sm:$0xff]   ;;  %v2110_v17 = vld [vmem:[#allocation4 + $0x38] sm:$0xff]   ;;  %v2120_v28 = vld [vmem:[#allocation7] sm:$0xff]  }
  0xf0   : > { %v2791_v2 = vld [vmem:[%s576_s13] sm:$0xff]   ;;  %1834 = vmatpush3.bf16.msra.mxu0 %v2094_v1  ;;  %v2111_v18 = vld [vmem:[#allocation2 + $0x38] sm:$0xff]   ;;  %v2124_v32 = vld [vmem:[#allocation7 + $0x20] sm:$0xff]  }
  0xf1   : > { %1859 = vmatprep.subr.bf16.mxu0 %v2443_v0  ;;  %1842 = vmatpush3.bf16.msra.mxu1 %v2098_v5  ;;  %v2108_v15 = vld [vmem:[#allocation4 + $0x30] sm:$0xff]   ;;  %v2123_v31 = vld [vmem:[#allocation7 + $0x18] sm:$0xff]   ;;  %v2112_v47 = vld [vmem:[#allocation9] sm:$0xff]   ;;  %s585_s20 = scalar_lea.vmem %s2920_s10, %s2781_s27 }
  0xf2   : > { %1843 = vmatprep.subr.bf16.mxu1 %v2443_v0  ;;  %v2109_v16 = vld [vmem:[#allocation2 + $0x30] sm:$0xff]   ;;  %v1715_v36 = vld [vmem:[#allocation6] ss:$0 sm:$0xff]  ;;  %v2116_v51 = vld [vmem:[#allocation9 + $0x20] sm:$0xff]  }
  0xf3   : > { %1836 = vmatmul.mubr.msk.bf16.vlgmr.msra.gmra.mrb[0].mxu0 %vm602_vm1, %v2791_v2  ;;  %v2121_v29 = vld [vmem:[#allocation7 + $0x8] sm:$0xff]   ;;  %v2122_v30 = vld [vmem:[#allocation7 + $0x10] sm:$0xff]   ;;  %v2115_v50 = vld [vmem:[#allocation9 + $0x18] sm:$0xff]  }
  0xf4   : > { %1860 = vmatpush3.bf16.msra.mxu0 %v2097_v4  ;;  %1875 = vmatprep.mubr.msk.bf16.mxu0 %vm2444_vm0, %v2443_v0  ;;  %v2125_v33 = vld [vmem:[#allocation7 + $0x28] sm:$0xff]   ;;  %v2126_v34 = vld [vmem:[#allocation7 + $0x30] sm:$0xff]   ;;  %v2119_v54 = vld [vmem:[#allocation9 + $0x38] sm:$0xff]  }
  0xf5   : > { %1861 = vmatprep.subr.bf16.mxu0 %v2443_v0  ;;  %1844 = vmatpush3.bf16.msra.mxu1 %v2100_v7  ;;  %v2113_v48 = vld [vmem:[#allocation9 + $0x8] sm:$0xff]   ;;  %v2114_v49 = vld [vmem:[#allocation9 + $0x10] sm:$0xff]   ;;  %v2127_v55 = vld [vmem:[#allocation7 + $0x38] sm:$0xff]  }
  0xf6   : > { %1845 = vmatprep.subr.bf16.mxu1 %v2443_v0  ;;  %v2117_v52 = vld [vmem:[#allocation9 + $0x28] sm:$0xff]   ;;  %v2118_v53 = vld [vmem:[#allocation9 + $0x30] sm:$0xff]   ;;  %v2128_v59 = vld [vmem:[#allocation12] sm:$0xff]  }
  0xf7   : > { %v2129_v62 = vld [vmem:[#allocation12 + $0x8] sm:$0xff]   ;;  %v2130_v63 = vld [vmem:[#allocation12 + $0x10] sm:$0xff]   ;;  %v2132_v3 = vld [vmem:[#allocation12 + $0x20] sm:$0xff]  }
  0xf8   : > { %1862 = vmatpush3.bf16.msra.mxu0 %v2099_v6 }
  0xf9   : > { %1863 = vmatprep.subr.bf16.mxu0 %v2443_v0  ;;  %1846 = vmatpush3.bf16.msra.mxu1 %v2102_v9  ;;  %v2134_v9 = vld [vmem:[#allocation12 + $0x30] sm:$0xff]  }
  0xfa   : > { %1847 = vmatprep.subr.bf16.mxu1 %v2443_v0 }
  0xfc   : > { %1864 = vmatpush3.bf16.msra.mxu0 %v2101_v8  ;;  %v2133_v8 = vld [vmem:[#allocation12 + $0x28] sm:$0xff]  }
  0xfd   : > { %1865 = vmatprep.subr.bf16.mxu0 %v2443_v0  ;;  %1848 = vmatpush3.bf16.msra.mxu1 %v2104_v11 }
  0xfe   : > { %1849 = vmatprep.subr.bf16.mxu1 %v2443_v0 }
 0x100   : > { %1866 = vmatpush3.bf16.msra.mxu0 %v2103_v10  ;;  %v2135_v10 = vld [vmem:[#allocation12 + $0x38] sm:$0xff]  }
 0x101   : > { %1867 = vmatprep.subr.bf16.mxu0 %v2443_v0  ;;  %1850 = vmatpush3.bf16.msra.mxu1 %v2106_v13 }
 0x102   : > { %1851 = vmatprep.subr.bf16.mxu1 %v2443_v0 }
 0x104   : > { %1868 = vmatpush3.bf16.msra.mxu0 %v2105_v12  ;;  %v1733_v12 = vld [vmem:[%s2892_s7] ss:$0 sm:$0xff] }
 0x105   : > { %1869 = vmatprep.subr.bf16.mxu0 %v2443_v0  ;;  %1852 = vmatpush3.bf16.msra.mxu1 %v2108_v15 }
 0x106   : > { %1853 = vmatprep.subr.bf16.mxu1 %v2443_v0 }
 0x108   : > { %1870 = vmatpush3.bf16.msra.mxu0 %v2107_v14 }
 0x109   : > { %1871 = vmatprep.subr.bf16.mxu0 %v2443_v0  ;;  %1854 = vmatpush3.bf16.msra.mxu1 %v2110_v17 }
 0x10a   : > { %1905 = vmatprep.subr.bf16.mxu1 %v2443_v0 }
 0x10c   : > { %1872 = vmatpush3.bf16.msra.mxu0 %v2109_v16  ;;  %1856 = vmatmul.mubr.bf16.vlgmr.msra.gmra.mrb[0].mxu1 %v2094_v1  ;;  %v2131_v1 = vld [vmem:[#allocation12 + $0x18] sm:$0xff]  }
 0x10d   : > { %1873 = vmatprep.subr.bf16.mxu0 %v2443_v0  ;;  %1921 = vmatprep.mubr.msk.bf16.mxu1 %vm2444_vm0, %v2443_v0 }
 0x10e   : > { %1906 = vmatpush3.bf16.msra.mxu1 %v2120_v28  ;;  %v2142_v28 = vld [vmem:[#allocation10 + $0x30] sm:$0xff]  }
 0x10f   : > { %1907 = vmatprep.subr.bf16.mxu1 %v2443_v0 }
 0x110   : > { %1874 = vmatpush3.bf16.msra.mxu0 %v2111_v18 }
 0x111   : > { %1879 = vmatprep.subr.bf16.mxu0 %v2443_v0 }
 0x112   : > { %1908 = vmatpush3.bf16.msra.mxu1 %v2121_v29  ;;  %v2143_v29 = vld [vmem:[#allocation10 + $0x38] sm:$0xff]  }
 0x113   : > { %1909 = vmatprep.subr.bf16.mxu1 %v2443_v0 }
 0x116   : > { %1910 = vmatpush3.bf16.msra.mxu1 %v2122_v30  ;;  %v2144_v30 = vld [vmem:[#allocation13] sm:$0xff]  }
 0x117   : > { %1911 = vmatprep.subr.bf16.mxu1 %v2443_v0 }
 0x11a   : > { %1912 = vmatpush3.bf16.msra.mxu1 %v2123_v31  ;;  %v2145_v31 = vld [vmem:[#allocation13 + $0x8] sm:$0xff]  }
 0x11b   : > { %1913 = vmatprep.subr.bf16.mxu1 %v2443_v0 }
 0x11e   : > { %1914 = vmatpush3.bf16.msra.mxu1 %v2124_v32 }
 0x11f   : > { %1915 = vmatprep.subr.bf16.mxu1 %v2443_v0 }
 0x122   : > { %1916 = vmatpush3.bf16.msra.mxu1 %v2125_v33 }
 0x123   : > { %1917 = vmatprep.subr.bf16.mxu1 %v2443_v0 }
 0x126   : > { %1918 = vmatpush3.bf16.msra.mxu1 %v2126_v34 }
 0x127   : > { %1919 = vmatprep.subr.bf16.mxu1 %v2443_v0 }
 0x12a   : > { %1920 = vmatpush3.bf16.msra.mxu1 %v2127_v55 }
 0x12b   : > { %1931 = vmatprep.subr.bf16.mxu1 %v2443_v0 }
 0x1c6   : > { %v640_v19 = vpop.f32.mrb[0].mxu0 }
 0x1c7   : > { %v1837_v20 = vpop.f32.mrb[1].mxu0 }
 0x1c8   : > { %v643_v21 = vpop.f32.mrb[2].mxu0 }
 0x1c9   : > { %v647_v22 = vpack.c.bf16 %v643_v21, %v640_v19  ;;  %v1838_v23 = vpop.f32.mrb[3].mxu0 }
 0x1ca   : > { %v2136_v23 = vld [vmem:[#allocation10] sm:$0xff]  }
 0x1cb   : > { %1876 = vmatmul.mubr.bf16.vlgmr.msra.gmra.mrb[4].mxu0 %v647_v22 }
 0x1cc   : > { %1881 = vmatprep.mubr.msk.bf16.mxu0 %vm2444_vm0, %v2443_v0 }
 0x1df   : > { %v762_v24 = vpop.f32.mrb[0].mxu1 }
 0x1e0   : > { %v1857_v25 = vpop.f32.mrb[1].mxu1 }
 0x1e1   : > { %v765_v26 = vpop.f32.mrb[2].mxu1  ;;  %v2138_v25 = vld [vmem:[#allocation10 + $0x10] sm:$0xff]  }
 0x1e2   : > { %v1858_v27 = vpop.f32.mrb[3].mxu1 }
 0x1e3   : > { %v2140_v27 = vld [vmem:[#allocation10 + $0x20] sm:$0xff]  }
 0x29e   : > { %v851_v35 = vpop.f32.mrb[4].mxu0 }
 0x29f   : > { %v852_v37 = vadd.f32 %v851_v35, %v762_v24  ;;  %v1877_v38 = vpop.f32.mrb[5].mxu0  ;;  %v2137_v24 = vld [vmem:[#allocation10 + $0x8] sm:$0xff]  }
 0x2a0   : > { %v854_v39 = vpop.f32.mrb[6].mxu0 }
 0x2a1   : > { %v865_v40 = vadd.f32 %v1715_v36, %v852_v37  ;;  %v855_v41 = vadd.f32 %v854_v39, %v765_v26  ;;  %v1878_v42 = vpop.f32.mrb[7].mxu0  ;;  %v2139_v26 = vld [vmem:[#allocation10 + $0x18] sm:$0xff]  }
 0x2a2   : > { %v2147_v42 = vld [vmem:[#allocation13 + $0x18] sm:$0xff]  }
 0x2a3   : > { %v866_v43 = vadd.f32 %v1715_v36, %v855_v41  ;;  %v867_v44 = vmax.f32 %v865_v40, 0.0  ;;  %v2146_v41 = vld [vmem:[#allocation13 + $0x10] sm:$0xff]  }
 0x2a5   : > { %v868_v45 = vmax.f32 %v866_v43, 0.0  ;;  %v2148_v43 = vld [vmem:[#allocation13 + $0x20] sm:$0xff]  }
 0x2a7   : > { %v869_v46 = vpack.c.bf16 %v868_v45, %v867_v44  ;;  %v2149_v44 = vld [vmem:[#allocation13 + $0x28] sm:$0xff]   ;;  %v2150_v45 = vld [vmem:[#allocation13 + $0x30] sm:$0xff]  }
 0x2a9   : > { %1880 = vmatpush3.bf16.msra.mxu0 %v869_v46 }
 0x2aa   : > { %1885 = vmatprep.subr.bf16.mxu0 %v2443_v0 }
 0x2ac   : > { %1882 = vmatmul.mubr.msk.bf16.vlgmr.msra.gmra.mrb[8].mxu0 %vm602_vm1, %v2791_v2 }
 0x2ad   : > { %1886 = vmatpush3.bf16.msra.mxu0 %v2112_v47  ;;  %1901 = vmatprep.mubr.msk.bf16.mxu0 %vm2444_vm0, %v2443_v0 }
 0x2ae   : > { %1887 = vmatprep.subr.bf16.mxu0 %v2443_v0 }
 0x2b1   : > { %1888 = vmatpush3.bf16.msra.mxu0 %v2113_v48 }
 0x2b2   : > { %1889 = vmatprep.subr.bf16.mxu0 %v2443_v0 }
 0x2b5   : > { %1890 = vmatpush3.bf16.msra.mxu0 %v2114_v49 }
 0x2b6   : > { %1891 = vmatprep.subr.bf16.mxu0 %v2443_v0 }
 0x2b9   : > { %1892 = vmatpush3.bf16.msra.mxu0 %v2115_v50  ;;  %v1751_v50 = vld [vmem:[%s2919_s16] ss:$0 sm:$0xff] }
 0x2ba   : > { %1893 = vmatprep.subr.bf16.mxu0 %v2443_v0 }
 0x2bd   : > { %1894 = vmatpush3.bf16.msra.mxu0 %v2116_v51 }
 0x2be   : > { %1895 = vmatprep.subr.bf16.mxu0 %v2443_v0 }
 0x2c1   : > { %1896 = vmatpush3.bf16.msra.mxu0 %v2117_v52 }
 0x2c2   : > { %1897 = vmatprep.subr.bf16.mxu0 %v2443_v0 }
 0x2c5   : > { %1898 = vmatpush3.bf16.msra.mxu0 %v2118_v53 }
 0x2c6   : > { %1899 = vmatprep.subr.bf16.mxu0 %v2443_v0 }
 0x2c9   : > { %1900 = vmatpush3.bf16.msra.mxu0 %v2119_v54 }
 0x2ca   : > { %1925 = vmatprep.subr.bf16.mxu0 %v2443_v0 }
 0x2cc   : > { %1902 = vmatmul.mubr.bf16.vlgmr.msra.gmra.mrb[12].mxu0 %v869_v46  ;;  %v2151_v46 = vld [vmem:[#allocation13 + $0x38] sm:$0xff]  }
 0x2cd   : > { %1927 = vmatprep.mubr.msk.bf16.mxu0 %vm2444_vm0, %v2443_v0 }
 0x37f   : > { %v904_v56 = vpop.f32.mrb[8].mxu0 }
 0x380   : > { %v1883_v57 = vpop.f32.mrb[9].mxu0 }
 0x381   : > { %v907_v58 = vpop.f32.mrb[10].mxu0 }
 0x382   : > { %v911_v60 = vpack.c.bf16 %v907_v58, %v904_v56  ;;  %v1884_v61 = vpop.f32.mrb[11].mxu0 }
 0x384   : > { %1922 = vmatmul.mubr.bf16.vlgmr.msra.gmra.mrb[4].mxu1 %v911_v60 }
 0x385   : > { %1932 = vmatpush3.bf16.msra.mxu1 %v2128_v59  ;;  %1947 = vmatprep.mubr.msk.bf16.mxu1 %vm2444_vm0, %v2443_v0 }
 0x386   : > { %1933 = vmatprep.subr.bf16.mxu1 %v2443_v0 }
 0x389   : > { %1934 = vmatpush3.bf16.msra.mxu1 %v2129_v62 }
 0x38a   : > { %1935 = vmatprep.subr.bf16.mxu1 %v2443_v0 }
 0x38d   : > { %1936 = vmatpush3.bf16.msra.mxu1 %v2130_v63 }
 0x38e   : > { %1937 = vmatprep.subr.bf16.mxu1 %v2443_v0 }
 0x391   : > { %1938 = vmatpush3.bf16.msra.mxu1 %v2131_v1  ;;  %v1510_v1 = vlaneseq }
 0x392   : > { %1939 = vmatprep.subr.bf16.mxu1 %v2443_v0 }
 0x395   : > { %1940 = vmatpush3.bf16.msra.mxu1 %v2132_v3  ;;  %v1511_v3 = vshrl.u32 %v1510_v1, 7 }
 0x396   : > { %1941 = vmatprep.subr.bf16.mxu1 %v2443_v0 }
 0x399   : > { %1942 = vmatpush3.bf16.msra.mxu1 %v2133_v8 }
 0x39a   : > { %1943 = vmatprep.subr.bf16.mxu1 %v2443_v0 }
 0x39d   : > { %1944 = vmatpush3.bf16.msra.mxu1 %v2134_v9 }
 0x39e   : > { %1945 = vmatprep.subr.bf16.mxu1 %v2443_v0 }
 0x39f   : > { %v1026_v4 = vpop.f32.mrb[12].mxu0 }
 0x3a0   : > { %v1903_v5 = vpop.f32.mrb[13].mxu0 }
 0x3a1   : > { %v1029_v6 = vpop.f32.mrb[14].mxu0  ;;  %1946 = vmatpush3.bf16.msra.mxu1 %v2135_v10  ;;  %v1512_v5 = vsub.s32 0, %v1511_v3 }
 0x3a2   : > { %v1904_v7 = vpop.f32.mrb[15].mxu0  ;;  %1971 = vmatprep.subr.bf16.mxu1 %v2443_v0 }
 0x457   : > { %v1115_v11 = vpop.f32.mrb[4].mxu1 }
 0x458   : > { %v1116_v13 = vadd.f32 %v1115_v11, %v1026_v4  ;;  %v1923_v14 = vpop.f32.mrb[5].mxu1  ;;  %v1421_v4 = vld [vmem:[#allocation15] sm:$0x1] }
 0x459   : > { %v1118_v15 = vpop.f32.mrb[6].mxu1 }
 0x45a   : > { %v1129_v16 = vadd.f32 %v1733_v12, %v1116_v13  ;;  %v1119_v17 = vadd.f32 %v1118_v15, %v1029_v6  ;;  %v1924_v18 = vpop.f32.mrb[7].mxu1 }
 0x45c   : > { %v1130_v19 = vadd.f32 %v1733_v12, %v1119_v17  ;;  %v1131_v20 = vmax.f32 %v1129_v16, 0.0 }
 0x45e   : > { %v1132_v21 = vmax.f32 %v1130_v19, 0.0 }
 0x460   : > { %v1133_v22 = vpack.c.bf16 %v1132_v21, %v1131_v20 }
 0x462   : > { %1926 = vmatpush3.bf16.msra.mxu0 %v1133_v22  ;;  %1948 = vmatmul.mubr.bf16.vlgmr.msra.gmra.mrb[8].mxu1 %v1133_v22 }
 0x463   : > { %1951 = vmatprep.subr.bf16.mxu0 %v2443_v0  ;;  %1987 = vmatprep.mubr.msk.bf16.mxu1 %vm2444_vm0, %v2443_v0 }
 0x464   : > { %1972 = vmatpush3.bf16.msra.mxu1 %v2144_v30 }
 0x465   : > { %1928 = vmatmul.mubr.msk.bf16.vlgmr.msra.gmra.mrb[16].mxu0 %vm602_vm1, %v2791_v2  ;;  %v2141_v2 = vld [vmem:[#allocation10 + $0x28] sm:$0xff]   ;;  %1973 = vmatprep.subr.bf16.mxu1 %v2443_v0 }
 0x466   : > { %1952 = vmatpush3.bf16.msra.mxu0 %v2136_v23  ;;  %1967 = vmatprep.mubr.msk.bf16.mxu0 %vm2444_vm0, %v2443_v0 }
 0x467   : > { %1953 = vmatprep.subr.bf16.mxu0 %v2443_v0 }
 0x468   : > { %1974 = vmatpush3.bf16.msra.mxu1 %v2145_v31 }
 0x469   : > { %1975 = vmatprep.subr.bf16.mxu1 %v2443_v0 }
 0x46a   : > { %1954 = vmatpush3.bf16.msra.mxu0 %v2137_v24 }
 0x46b   : > { %1955 = vmatprep.subr.bf16.mxu0 %v2443_v0 }
 0x46c   : > { %1976 = vmatpush3.bf16.msra.mxu1 %v2146_v41 }
 0x46d   : > { %1977 = vmatprep.subr.bf16.mxu1 %v2443_v0 }
 0x46e   : > { %1956 = vmatpush3.bf16.msra.mxu0 %v2138_v25 }
 0x46f   : > { %1957 = vmatprep.subr.bf16.mxu0 %v2443_v0 }
 0x470   : > { %1978 = vmatpush3.bf16.msra.mxu1 %v2147_v42 }
 0x471   : > { %1979 = vmatprep.subr.bf16.mxu1 %v2443_v0 }
 0x472   : > { %1958 = vmatpush3.bf16.msra.mxu0 %v2139_v26 }
 0x473   : > { %1959 = vmatprep.subr.bf16.mxu0 %v2443_v0 }
 0x474   : > { %1980 = vmatpush3.bf16.msra.mxu1 %v2148_v43 }
 0x475   : > { %1981 = vmatprep.subr.bf16.mxu1 %v2443_v0 }
 0x476   : > { %1960 = vmatpush3.bf16.msra.mxu0 %v2140_v27 }
 0x477   : > { %1961 = vmatprep.subr.bf16.mxu0 %v2443_v0 }
 0x478   : > { %1982 = vmatpush3.bf16.msra.mxu1 %v2149_v44 }
 0x479   : > { %1983 = vmatprep.subr.bf16.mxu1 %v2443_v0 }
 0x47a   : > { %1962 = vmatpush3.bf16.msra.mxu0 %v2141_v2 }
 0x47b   : > { %1963 = vmatprep.subr.bf16.mxu0 %v2443_v0 }
 0x47c   : > { %1984 = vmatpush3.bf16.msra.mxu1 %v2150_v45 }
 0x47d   : > { %1985 = vmatprep.subr.bf16.mxu1 %v2443_v0 }
 0x47e   : > { %1964 = vmatpush3.bf16.msra.mxu0 %v2142_v28 }
 0x47f   : > { %1965 = vmatprep.subr.bf16.mxu0 %v2443_v0 }
 0x480   : > { %1986 = vmatpush3.bf16.msra.mxu1 %v2151_v46 }
 0x482   : > { %1966 = vmatpush3.bf16.msra.mxu0 %v2143_v29 }
 0x535   : > { %v1290_v32 = vpop.f32.mrb[8].mxu1 }
 0x536   : > { %v1949_v33 = vpop.f32.mrb[9].mxu1 }
 0x537   : > { %v1293_v34 = vpop.f32.mrb[10].mxu1 }
 0x538   : > { %v1168_v35 = vpop.f32.mrb[16].mxu0  ;;  %v1950_v36 = vpop.f32.mrb[11].mxu1 }
 0x539   : > { %v1929_v37 = vpop.f32.mrb[17].mxu0 }
 0x53a   : > { %v1171_v38 = vpop.f32.mrb[18].mxu0 }
 0x53b   : > { %v1175_v39 = vpack.c.bf16 %v1171_v38, %v1168_v35  ;;  %v1930_v40 = vpop.f32.mrb[19].mxu0 }
 0x53d   : > { %1968 = vmatmul.mubr.bf16.vlgmr.msra.gmra.mrb[20].mxu0 %v1175_v39 }
 0x610   : > { %v1379_v47 = vpop.f32.mrb[20].mxu0 }
 0x611   : > { %v1380_v48 = vadd.f32 %v1379_v47, %v1290_v32  ;;  %v1969_v49 = vpop.f32.mrb[21].mxu0 }
 0x612   : > { %v1382_v51 = vpop.f32.mrb[22].mxu0 }
 0x613   : > { %v1383_v52 = vadd.f32 %v1382_v51, %v1293_v34  ;;  %v1970_v53 = vpop.f32.mrb[23].mxu0  ;;  %v1393_v54 = vadd.f32 %v1751_v50, %v1380_v48 }
 0x615   : > { %v1394_v55 = vadd.f32 %v1751_v50, %v1383_v52 }
 0x617   : > { %v1395_v56 = vadd.f32 %v1394_v55, %v1393_v54 }
 0x619   : > { %v1396_v57 = vrot.slane %v1395_v56, 4 }
 0x61b   : > { %v1397_v58 = vadd.f32 %v1396_v57, %v1395_v56 }
 0x61d   : > { %v1398_v59 = vrot.slane %v1397_v58, 2 }
 0x61f   : > { %v1399_v60 = vadd.f32 %v1398_v59, %v1397_v58 }
 0x621   : > { %v1400_v0 = vrot.slane %v1399_v60, 1 }
 0x623   : > { %v1401_v61 = vadd.f32 %v1400_v0, %v1399_v60 }
 0x625   : > { %v1403_v62 = vmul.f32 0.0625, %v1401_v61 }
 0x627   : > { %v1404_v63 = vpack.c.bf16 %v1403_v62, %v1403_v62 }
 0x629   : > { %1988 = vmatmul.mubr.bf16.vlgmr.msra.gmra.mrb[12].mxu1 %v1404_v63 }
 0x6fc   : > { %v1504_v6 = vpop.f32.mrb[12].mxu1 }
 0x6fd   : > { %v1505_v7 = vadd.f32 %v1504_v6, %v1421_v4  ;;  %v1989_v8 = vpop.f32.mrb[13].mxu1 }
 0x6fe   : > { %v1507_v9 = vpop.f32.mrb[14].mxu1 }
 0x6ff   : > { %v1513_v10 = vrot.slane %v1505_v7, %v1512_v5  ;;  %v1990_v11 = vpop.f32.mrb[15].mxu1 }
 0x701   : > { %1514 = vst [vmem:[%s585_s20] sm:$0xff] %v1513_v10 }
 0x702 PF: > { %s2921_s21 = sld [smem:[#allocation21_spill]] }
 0x708   : > { %s28_s25 = sadd.s32 1, %s2921_s21  }
 0x709   : > { %p25_p11 = scmp.ge.s32.totalorder %s28_s25, 4  }
 0x70b   :  { %27 = sbr.rel (!%p25_p11) target bundleno = 8 (0x8), region = 142 }
 0x712   :  { %1534 = vsyncpa [#allocation3], 1 }
 0x713   :  { %1536 = vsyncpa [#allocation3 + $0x1], 1 }
 0x714   :  { %1537 = vsyncpa [#allocation5], 1 }
 0x715   :  { %1538 = vsyncpa [#allocation8], 1 }
 0x716   :  { %1539 = vsyncpa [#allocation11], 1 }
 0x717   :  { %1540 = vsyncpa [#allocation14], 1 }

</bundles_post_ra>
